<compile_context>
chip_gen: v7x
topology: tpu7x:2x2x1
jax: 0.10.0
libtpu: 0.0.40
codegen_flags: <defaults>
</compile_context>

<pallas_src>
import functools
import math

import jax
import jax.numpy as jnp
from jax import lax
from jax.experimental import pallas as pl
from jax.experimental.pallas import tpu as pltpu

IGNORE_LB = 255


def get_tsa_threshold(schedule, global_step, num_train_steps, start, end,
                      start_thresh=0.3):
    step_ratio = float(global_step) / float(num_train_steps)
    if schedule == 'linear':
        coeff = step_ratio
    elif schedule == 'exp':
        scale = 5
        coeff = math.exp((step_ratio - 1) * scale)
    elif schedule == 'log':
        scale = 5
        coeff = 1 - math.exp(-step_ratio * scale)
    else:
        raise ValueError(f"unknown tsa schedule: {schedule!r}")
    if step_ratio < start_thresh:
        coeff = 0
    return coeff * (end - start) + start


def _annealing_loss_kernel(logits_ref, labels_ref, loss_out_ref, mask_out_ref,
                           *, thresh, hw, tp, need_mask):
    # logits_ref: (1, C, TP)  -- classes on sublanes, pixels on lanes
    # labels_ref: (1, 1, TP)  int32
    x = logits_ref[0].astype(jnp.float32)                     # (C, TP)
    lbl = labels_ref[0]                                       # (1, TP)
    C = x.shape[0]

    # Per-pixel softmax statistics: reductions over the class (sublane) axis.
    col_max = jnp.max(x, axis=0, keepdims=True)                        # (1, TP)
    sum_exp = jnp.sum(jnp.exp(x - col_max), axis=0, keepdims=True)     # (1, TP)
    lse = jnp.log(sum_exp) + col_max                                   # (1, TP)
    # max softmax prob == exp(col_max - lse) == 1 / sum_exp  (exact reciprocal:
    # it feeds a threshold comparison, so no approx).
    max_prob = pl.reciprocal(sum_exp, approx=False)                    # (1, TP)

    # Logit at the label class via one-hot compare + sublane reduce.
    cls = lax.broadcasted_iota(jnp.int32, (C, tp), 0)
    onehot = cls == lbl
    label_logit = jnp.sum(jnp.where(onehot, x, 0.0), axis=0, keepdims=True)

    not_ignored = lbl != IGNORE_LB
    if need_mask:
        # Ragged last pixel block: mask out-of-range lanes in-kernel
        # (replaces the old wrapper-side jnp.pad of the whole logits tensor).
        lane = lax.broadcasted_iota(jnp.int32, (1, tp), 1)
        in_range = (pl.program_id(1) * tp + lane) < hw
        not_ignored = jnp.logical_and(not_ignored, in_range)

    # CrossEntropyLoss(ignore_index=255, reduction='none'): 0 for ignored px.
    ce = jnp.where(not_ignored, lse - label_logit, 0.0)                # (1, TP)

    # First argmax over classes (matches torch.max tie-breaking).
    idx_cand = jnp.where(x == col_max, cls, C)
    pred_idx = jnp.min(idx_cand, axis=0, keepdims=True)                # (1, TP)

    # loss_mask = 1 - (pred == label) * (max_prob > thresh)
    correct_conf = jnp.logical_and(pred_idx == lbl, max_prob > thresh)
    mask = jnp.where(correct_conf, 0.0, 1.0)
    if need_mask:
        mask = mask * in_range.astype(jnp.float32)

    loss_partial = jnp.sum(ce * mask)
    mask_partial = jnp.sum(mask)

    # Write this block's partial sums at [0, 0] of a lane-aligned (8, 128)
    # output tile (zeros elsewhere) so a plain jnp.sum in JAX finishes it.
    r = lax.broadcasted_iota(jnp.int32, (8, 128), 0)
    c = lax.broadcasted_iota(jnp.int32, (8, 128), 1)
    at00 = jnp.logical_and(r == 0, c == 0)
    loss_out_ref[...] = jnp.where(at00, loss_partial, 0.0)[None, None]
    mask_out_ref[...] = jnp.where(at00, mask_partial, 0.0)[None, None]


def annealing_loss(logits_nchw, labels_nhw, global_step, *,
                   tsa='linear', num_train_steps=100, num_class=None,
                   block_pixels=8192):
    N, C, H, W = logits_nchw.shape
    if num_class is None:
        num_class = C
    tsa_start = 1.0 / num_class
    # TSA threshold is a compile-time Python float: close over it (no SMEM op).
    thresh = float(get_tsa_threshold(tsa, global_step, num_train_steps,
                                     tsa_start, end=1))

    HW = H * W
    # Native NCHW viewed as (N, C, H*W): pixels on lanes, classes on sublanes.
    # No transpose, no pad, no HBM upcast (kernel casts to f32 internally).
    logits3d = logits_nchw.reshape(N, C, HW)
    labels3d = labels_nhw.reshape(N, 1, HW).astype(jnp.int32)

    if HW <= block_pixels:
        tp = HW                      # single full-width block per image
    else:
        tp = block_pixels            # multiple of 128
    grid_p = pl.cdiv(HW, tp)
    need_mask = (HW % tp) != 0
    grid = (N, grid_p)

    kernel = functools.partial(_annealing_loss_kernel, thresh=thresh, hw=HW,
                               tp=tp, need_mask=need_mask)

    out_shape = jax.ShapeDtypeStruct((N, grid_p, 8, 128), jnp.float32)
    out_spec = pl.BlockSpec((1, 1, 8, 128), lambda n, p: (n, p, 0, 0))

    loss_out, mask_out = pl.pallas_call(
        kernel,
        out_shape=(out_shape, out_shape),
        grid_spec=pltpu.PrefetchScalarGridSpec(
            num_scalar_prefetch=0,
            grid=grid,
            in_specs=[
                pl.BlockSpec((1, C, tp), lambda n, p: (n, 0, p)),   # logits
                pl.BlockSpec((1, 1, tp), lambda n, p: (n, 0, p)),   # labels
            ],
            out_specs=(out_spec, out_spec),
        ),
        compiler_params=pltpu.CompilerParams(
            dimension_semantics=("parallel", "parallel"),
            vmem_limit_bytes=32 * 1024 * 1024),
    )(logits3d, labels3d)

    sum_loss = jnp.sum(loss_out)
    sum_mask = jnp.sum(mask_out)
    # torch: loss[loss_mask] selection + mean; empty selection -> 0.
    return jnp.where(sum_mask > 0, sum_loss / sum_mask, jnp.float32(0.0))


def annealing_loss_ref(logits_nchw, labels_nhw, global_step, *,
                       tsa='linear', num_train_steps=100):
    """Pure-JAX reference for correctness checking."""
    N, C, H, W = logits_nchw.shape
    thresh = get_tsa_threshold(tsa, global_step, num_train_steps, 1.0 / C, end=1)
    x = jnp.transpose(logits_nchw, (0, 2, 3, 1)).reshape(-1, C).astype(jnp.float32)
    lbl = labels_nhw.reshape(-1).astype(jnp.int32)
    log_p = jax.nn.log_softmax(x, axis=-1)
    safe_lbl = jnp.where(lbl == IGNORE_LB, 0, lbl)
    ce = -jnp.take_along_axis(log_p, safe_lbl[:, None], axis=-1)[:, 0]
    ce = jnp.where(lbl == IGNORE_LB, 0.0, ce)
    pred_idx = jnp.argmax(x, axis=-1)
    max_prob = jnp.max(jax.nn.softmax(x, axis=-1), axis=-1)
    mask = 1.0 - ((pred_idx == lbl) & (max_prob > thresh)).astype(jnp.float32)
    denom = jnp.sum(mask)
    return jnp.where(denom > 0, jnp.sum(ce * mask) / denom, 0.0)


if __name__ == "__main__":
    key = jax.random.PRNGKey(0)
    k1, k2, k3 = jax.random.split(key, 3)

    N, C, H, W = 2, 19, 16, 16               # num_class=19 (module default)
    logits = jax.random.normal(k1, (N, C, H, W), dtype=jnp.float32) * 2.0
    labels = jax.random.randint(k2, (N, H, W), 0, C).astype(jnp.int32)
    ignore = jax.random.uniform(k3, (N, H, W)) < 0.1
    labels = jnp.where(ignore, IGNORE_LB, labels)

    global_step, num_train_steps = 50, 100

    out = annealing_loss(logits, labels, global_step,
                         num_train_steps=num_train_steps)
    out = jax.block_until_ready(out)

    ref = annealing_loss_ref(logits, labels, global_step,
                             num_train_steps=num_train_steps)
    assert jnp.allclose(out, ref, atol=1e-5, rtol=1e-5), (out, ref)
    print("KERNEL_OK")
</pallas_src>

<mosaic_0001>
module attributes {stable_mosaic.version = 11 : i64} {
  func.func @_annealing_loss_kernel(%arg0: i32, %arg1: i32, %arg2: memref<1x19x256xf32, #tpu.memory_space<vmem>>, %arg3: memref<1x1x256xi32, #tpu.memory_space<vmem>>, %arg4: memref<1x1x8x128xf32, #tpu.memory_space<vmem>>, %arg5: memref<1x1x8x128xf32, #tpu.memory_space<vmem>>) attributes {dimension_semantics = [#tpu.dimension_semantics<parallel>, #tpu.dimension_semantics<parallel>], iteration_bounds = array<i64: 2, 1>, scalar_prefetch = 0 : i64, scratch_operands = 0 : i64, tpu.core_type = #tpu.core_type<tc>, window_params = [{transform_indices = @transform_0, window_bounds = array<i64: 1, 19, 256>}, {transform_indices = @transform_1, window_bounds = array<i64: 1, 1, 256>}, {transform_indices = @transform_2, window_bounds = array<i64: 1, 1, 8, 128>}, {transform_indices = @transform_3, window_bounds = array<i64: 1, 1, 8, 128>}]} {
    %c0 = arith.constant 0 : index
    %c0_0 = arith.constant 0 : index
    %c0_1 = arith.constant 0 : index
    %0 = vector.load %arg2[%c0, %c0_0, %c0_1] : memref<1x19x256xf32, #tpu.memory_space<vmem>>, vector<1x19x256xf32>
    %1 = vector.shape_cast %0 : vector<1x19x256xf32> to vector<19x256xf32>
    %c0_2 = arith.constant 0 : index
    %c0_3 = arith.constant 0 : index
    %c0_4 = arith.constant 0 : index
    %2 = vector.load %arg3[%c0_2, %c0_3, %c0_4] : memref<1x1x256xi32, #tpu.memory_space<vmem>>, vector<1x1x256xi32>
    %3 = vector.shape_cast %2 : vector<1x1x256xi32> to vector<1x256xi32>
    %cst = arith.constant dense<0xFF800000> : vector<256xf32>
    %4 = vector.multi_reduction <maximumf>, %1, %cst [0] : vector<19x256xf32> to vector<256xf32>
    %5 = vector.shape_cast %4 : vector<256xf32> to vector<1x256xf32>
    %6 = vector.broadcast %5 : vector<1x256xf32> to vector<19x256xf32>
    %7 = arith.subf %1, %6 : vector<19x256xf32>
    %8 = math.exp %7 : vector<19x256xf32>
    %cst_5 = arith.constant dense<0.000000e+00> : vector<256xf32>
    %9 = vector.multi_reduction <add>, %8, %cst_5 [0] : vector<19x256xf32> to vector<256xf32>
    %10 = vector.shape_cast %9 : vector<256xf32> to vector<1x256xf32>
    %11 = math.log %10 : vector<1x256xf32>
    %12 = arith.addf %11, %5 : vector<1x256xf32>
    %13 = tpu.reciprocal %10 : vector<1x256xf32> -> vector<1x256xf32>
    %14 = tpu.iota {dimensions = array<i32: 0>} : vector<19x256xi32>
    %15 = vector.broadcast %3 : vector<1x256xi32> to vector<19x256xi32>
    %16 = arith.cmpi eq, %14, %15 : vector<19x256xi32>
    %cst_6 = arith.constant 0.000000e+00 : f32
    %17 = vector.broadcast %cst_6 : f32 to vector<19x256xf32>
    %18 = arith.select %16, %1, %17 : vector<19x256xi1>, vector<19x256xf32>
    %cst_7 = arith.constant dense<0.000000e+00> : vector<256xf32>
    %19 = vector.multi_reduction <add>, %18, %cst_7 [0] : vector<19x256xf32> to vector<256xf32>
    %20 = vector.shape_cast %19 : vector<256xf32> to vector<1x256xf32>
    %c255_i32 = arith.constant 255 : i32
    %21 = vector.broadcast %c255_i32 : i32 to vector<1x256xi32>
    %22 = arith.cmpi ne, %3, %21 : vector<1x256xi32>
    %23 = arith.subf %12, %20 : vector<1x256xf32>
    %cst_8 = arith.constant 0.000000e+00 : f32
    %24 = vector.broadcast %cst_8 : f32 to vector<1x256xf32>
    %25 = arith.select %22, %23, %24 : vector<1x256xi1>, vector<1x256xf32>
    %26 = vector.broadcast %5 : vector<1x256xf32> to vector<19x256xf32>
    %27 = arith.cmpf oeq, %1, %26 : vector<19x256xf32>
    %c19_i32 = arith.constant 19 : i32
    %28 = vector.broadcast %c19_i32 : i32 to vector<19x256xi32>
    %29 = arith.select %27, %14, %28 : vector<19x256xi1>, vector<19x256xi32>
    %cst_9 = arith.constant dense<2147483647> : vector<256xi32>
    %30 = vector.multi_reduction <minsi>, %29, %cst_9 [0] : vector<19x256xi32> to vector<256xi32>
    %31 = vector.shape_cast %30 : vector<256xi32> to vector<1x256xi32>
    %32 = arith.cmpi eq, %31, %3 : vector<1x256xi32>
    %cst_10 = arith.constant 0.526315808 : f32
    %33 = vector.broadcast %cst_10 : f32 to vector<1x256xf32>
    %34 = arith.cmpf ogt, %13, %33 : vector<1x256xf32>
    %35 = arith.andi %32, %34 : vector<1x256xi1>
    %cst_11 = arith.constant 0.000000e+00 : f32
    %cst_12 = arith.constant 1.000000e+00 : f32
    %36 = vector.broadcast %cst_11 : f32 to vector<1x256xf32>
    %37 = vector.broadcast %cst_12 : f32 to vector<1x256xf32>
    %38 = arith.select %35, %36, %37 : vector<1x256xi1>, vector<1x256xf32>
    %39 = arith.mulf %25, %38 : vector<1x256xf32>
    %40 = vector.shape_cast %39 : vector<1x256xf32> to vector<1x1x256xf32>
    %cst_13 = arith.constant dense<0.000000e+00> : vector<1xf32>
    %41 = vector.multi_reduction <add>, %40, %cst_13 [1, 2] : vector<1x1x256xf32> to vector<1xf32>
    %42 = vector.shape_cast %41 : vector<1xf32> to vector<1x1x1xf32>
    %43 = vector.extract %42[0, 0, 0] : f32 from vector<1x1x1xf32>
    %44 = vector.shape_cast %38 : vector<1x256xf32> to vector<1x1x256xf32>
    %cst_14 = arith.constant dense<0.000000e+00> : vector<1xf32>
    %45 = vector.multi_reduction <add>, %44, %cst_14 [1, 2] : vector<1x1x256xf32> to vector<1xf32>
    %46 = vector.shape_cast %45 : vector<1xf32> to vector<1x1x1xf32>
    %47 = vector.extract %46[0, 0, 0] : f32 from vector<1x1x1xf32>
    %48 = tpu.iota {dimensions = array<i32: 0>} : vector<8x128xi32>
    %49 = tpu.iota {dimensions = array<i32: 1>} : vector<8x128xi32>
    %c0_i32 = arith.constant 0 : i32
    %50 = vector.broadcast %c0_i32 : i32 to vector<8x128xi32>
    %51 = arith.cmpi eq, %48, %50 : vector<8x128xi32>
    %c0_i32_15 = arith.constant 0 : i32
    %52 = vector.broadcast %c0_i32_15 : i32 to vector<8x128xi32>
    %53 = arith.cmpi eq, %49, %52 : vector<8x128xi32>
    %54 = arith.andi %51, %53 : vector<8x128xi1>
    %cst_16 = arith.constant 0.000000e+00 : f32
    %55 = vector.broadcast %43 : f32 to vector<8x128xf32>
    %56 = vector.broadcast %cst_16 : f32 to vector<8x128xf32>
    %57 = arith.select %54, %55, %56 : vector<8x128xi1>, vector<8x128xf32>
    %58 = vector.shape_cast %57 : vector<8x128xf32> to vector<1x1x8x128xf32>
    %c0_17 = arith.constant 0 : index
    %c0_18 = arith.constant 0 : index
    %c0_19 = arith.constant 0 : index
    %c0_20 = arith.constant 0 : index
    %59 = vector.load %arg4[%c0_17, %c0_18, %c0_19, %c0_20] : memref<1x1x8x128xf32, #tpu.memory_space<vmem>>, vector<1x1x8x128xf32>
    tpu.vector_store %arg4[%c0_17, %c0_18, %c0_19, %c0_20], %58 {strides = array<i32>} : memref<1x1x8x128xf32, #tpu.memory_space<vmem>>, vector<1x1x8x128xf32>,
    %cst_21 = arith.constant 0.000000e+00 : f32
    %60 = vector.broadcast %47 : f32 to vector<8x128xf32>
    %61 = vector.broadcast %cst_21 : f32 to vector<8x128xf32>
    %62 = arith.select %54, %60, %61 : vector<8x128xi1>, vector<8x128xf32>
    %63 = vector.shape_cast %62 : vector<8x128xf32> to vector<1x1x8x128xf32>
    %c0_22 = arith.constant 0 : index
    %c0_23 = arith.constant 0 : index
    %c0_24 = arith.constant 0 : index
    %c0_25 = arith.constant 0 : index
    %64 = vector.load %arg5[%c0_22, %c0_23, %c0_24, %c0_25] : memref<1x1x8x128xf32, #tpu.memory_space<vmem>>, vector<1x1x8x128xf32>
    tpu.vector_store %arg5[%c0_22, %c0_23, %c0_24, %c0_25], %63 {strides = array<i32>} : memref<1x1x8x128xf32, #tpu.memory_space<vmem>>, vector<1x1x8x128xf32>,
    return
  }
  func.func @transform_0(%arg0: i32, %arg1: i32) -> (i32, i32, i32) {
    %c0_i32 = arith.constant 0 : i32
    %c0_i32_0 = arith.constant 0 : i32
    return %arg0, %c0_i32, %arg1 : i32, i32, i32
  }
  func.func @transform_1(%arg0: i32, %arg1: i32) -> (i32, i32, i32) {
    %c0_i32 = arith.constant 0 : i32
    %c0_i32_0 = arith.constant 0 : i32
    return %arg0, %c0_i32, %arg1 : i32, i32, i32
  }
  func.func @transform_2(%arg0: i32, %arg1: i32) -> (i32, i32, i32, i32) {
    %c0_i32 = arith.constant 0 : i32
    %c0_i32_0 = arith.constant 0 : i32
    %c0_i32_1 = arith.constant 0 : i32
    return %arg0, %arg1, %c0_i32, %c0_i32_0 : i32, i32, i32, i32
  }
  func.func @transform_3(%arg0: i32, %arg1: i32) -> (i32, i32, i32, i32) {
    %c0_i32 = arith.constant 0 : i32
    %c0_i32_0 = arith.constant 0 : i32
    %c0_i32_1 = arith.constant 0 : i32
    return %arg0, %arg1, %c0_i32, %c0_i32_0 : i32, i32, i32, i32
  }
}

</mosaic_0001>

<bundles_post_ra>
// kernel: tpu_custom_call.1
= control target key start
LH: loop header
LB: loop body
LE: loop exit
PB: predicated region body
PF: predicated region fallthrough
CT: control target
= control target key end

     0   :  { %9 = vsyncpa [#allocation3], 0  ;;  %s1155_s0 = inlined_call_operand.vmem [shape: f32[2,19,256], index: 0, kind: input, shape index: {}]   ;;  %s1156_s1 = inlined_call_operand.vmem [shape: s32[2,1,256], index: 1, kind: input, shape index: {}]   ;;  %s1157_s2 = inlined_call_operand.hbm [shape: f32[2,1,8,128], index: 2, kind: output, shape index: {0}]   ;;  %s1158_s3 = inlined_call_operand.hbm [shape: f32[2,1,8,128], index: 3, kind: output, shape index: {1}]  }
   0x1   :  { %11 = vsyncpa [#allocation3 + $0x1], 0 }
   0x2   :  { %12 = vsyncpa [#allocation5], 0 }
   0x3   :  { %14 = vsyncpa [#allocation5 + $0x1], 0  ;;  %s887_s12 = smov 0   ;;  %s889_s13 = smov 0  }
   0x4   :  { %s891_s14 = smov 0   ;;  %s893_s15 = smov 0  }
   0x5   :  { %s895_s16 = smov 0   ;;  %s897_s17 = smov 0  }
   0x6 LB: > { %s649_s18 = sadd.s32 4294967295, %s861_s17   ;;  %s650_s19 = sadd.s32 4294967294, %s861_s17   ;;  %s861_s17 = sphi %s897_s17, %s20_s17   ;;  %s857_s16 = sphi %s895_s16, %s1167_s16   ;;  %s853_s15 = sphi %s893_s15, %s1166_s15   ;;  %s849_s14 = sphi %s891_s14, %s1165_s14   ;;  %s845_s13 = sphi %s889_s13, %s1164_s13   ;;  %s841_s12 = sphi %s887_s12, %s1163_s12  }
   0x7   : > { %s32_s20 = sadd.s32 1, %s857_s16  ;;  %s97_s21 = sadd.s32 1, %s849_s14 }
   0x8   : > { %p34_p0 = scmp.ge.s32.totalorder %s32_s20, 2  ;;  %p107_p1 = scmp.ne.s32.totalorder %s849_s14, %s845_s13 }
   0x9   : > { %p108_p2 = scmp.eq.s32.totalorder %s649_s18, 1  ;;  %p113_p3 = scmp.ne.s32.totalorder %s845_s13, %s841_s12 }
   0xa   : > { %s1169_s20 = smov (%p34_p0, %s32_s20), 0  ;;  %p114_p5 = scmp.eq.s32.totalorder %s650_s19, 1 }
   0xb   : > { %p927_p4 = por %p108_p2, %p107_p1  ;;  %s92_s23 = ssub.s32 %s857_s16, %s1169_s20 }
   0xc   : > { %p653_p6 = scmp.ge.s32.totalorder %s861_s17, 1  ;;  %p95_p7 = scmp.eq.s32.totalorder %s92_s23, 0 }
   0xd   : > { %p934_p8 = por %p114_p5, %p113_p3  ;;  %p185_p9 = scmp.lt.s32.totalorder %s861_s17, 3 }
   0xe   : > { %s940_s25 = scalar_select %p95_p7, %s849_s14, %s97_s21  }
   0xf   : > { %p186_p10 = pnand %p653_p6, %p185_p9 }
  0x10   : > { %p227_p11 = scmp.lt.s32.totalorder (!%p186_p10), %s853_s15, 1  ;;  %vm252_vm0 = vcmask (!%p186_p10), 1042432   ;;  %v315_v16 = vlaneseq (!%p186_p10)  ;;  %s1054_s8 = sand.u32 (!%p186_p10), 1, %s845_s13  }
  0x11   : > { %189 = sbr.rel (%p186_p10) target bundleno = 363 (0x16b), region = 28  ;;  %s654_s9 = sshll.u32 (!%p186_p10), %s1054_s8, 3 }
  0x12   : > { %v972_v21 = vshrl.u32 (!%p186_p10), %v315_v16, 7  ;;  %s660_s10 = sshll.u32 (!%p186_p10), %s853_s15, 7  ;;  %s218_s11 = scalar_lea.vmem (!%p186_p10), [#allocation2], %s654_s9 }
  0x13   : > { %s513_s18 = sshll.u32 (!%p186_p10), %s218_s11, 4  ;;  %s1064_s21 = scalar_lea.vmem (!%p186_p10), [#allocation4], %s654_s9  ;;  %s1074_s18 = int_to_ptr.vmem [resolvable:$true] %s513_s18 }
  0x14   : > { %v317_v26 = vadd.s32 (!%p186_p10), 8, %v972_v21  ;;  %v321_v27 = vsub.s32 (!%p186_p10), 0, %v972_v21  ;;  %v318_v35 = vadd.s32 (!%p186_p10), 16, %v972_v21  ;;  %v325_v36 = vsub.s32 (!%p186_p10), 1, %v972_v21  ;;  %s527_s23 = sshll.u32 (!%p186_p10), %s1064_s21, 4  ;;  %s1072_s28 = scalar_lea.hbm (!%p186_p10), %s1157_s2, %s660_s10  ;;  %s1083_s23 = int_to_ptr.vmem [resolvable:$true] %s527_s23 }
  0x15   : > { %s494_s5 = scalar_lea.sflag (!%p186_p10), [#allocation3], %s1054_s8  ;;  %s751_s6 = scalar_lea.vmem (!%p186_p10), %s1074_s18, 128 }
  0x16   : > { %p752_p12 = scmp.ne.s32.totalorder (!%p186_p10), %s1074_s18, %s751_s6 }
  0x18   : > { %s944_s26 = scalar_select %p227_p11, %s853_s15, 1 }
  0x19   : > { %p753_p13 = pnand %p752_p12, %p927_p4 }
  0x1a   : > { %s664_s27 = smul.u32 48, %s944_s26  ;;  %s657_s4 = sshll.u32 %s944_s26, 1 }
  0x1b   : > { %s243_s7 = scalar_lea.vmem %s1156_s1, %s657_s4  ;;  %p754_p0 = pneg %p753_p13 }
  0x1c   : > { %s234_s30 = scalar_lea.vmem %s1155_s0, %s664_s27  ;;  %v983_v28 = vld [vmem:[%s243_s7] sm:$0x3]  ;;  %s865_s7 = smov [#allocation2]  }
  0x1d   : > { %v950_v0 = vld [vmem:[%s234_s30] sm:$0xff]  ;;  %v952_v1 = vld [vmem:[%s234_s30 + $0x8] sm:$0xff]  ;;  %v958_v4 = vld [vmem:[%s234_s30 + $0x10] sm:$0xff]  ;;  %v1004_v42 = vrot.slane %v983_v28, %v321_v27  ;;  %v1020_v45 = vrot.slane %v983_v28, %v325_v36  ;;  %s755_s9 = sshll.u32 %s865_s7, 4  ;;  %s756_s9 = int_to_ptr.vmem [resolvable:$false] %s755_s9 }
  0x1e   : > { %v954_v2 = vld [vmem:[%s234_s30 + $0x20] sm:$0x7]  ;;  %v956_v3 = vld [vmem:[%s234_s30 + $0x28] sm:$0x7]  ;;  %v960_v5 = vld [vmem:[%s234_s30 + $0x18] sm:$0xff]  ;;  %s1079_s30 = scalar_lea.hbm %s1158_s3, %s660_s10  ;;  %p758_p1 = scmp.lt.s32.totalorder %s1074_s18, %s756_s9 }
  0x1f   : > { %v253_v6 = vsel %vm252_vm0, %v954_v2, -inf  ;;  %v262_v7 = vsel %vm252_vm0, %v956_v3, -inf  ;;  %vm327_vm10 = vcmp.eq.s32.totalorder %v972_v21, %v1004_v42  ;;  %vm329_vm11 = vcmp.eq.s32.totalorder %v317_v26, %v1004_v42 }
  0x20   : > { %v254_v8 = vmax.f32 %v950_v0, %v253_v6  ;;  %v263_v9 = vmax.f32 %v952_v1, %v262_v7  ;;  %vm328_vm13 = vcmp.eq.s32.totalorder %v972_v21, %v1020_v45  ;;  %vm330_vm14 = vcmp.eq.s32.totalorder %v317_v26, %v1020_v45 }
  0x21   : > { %vm331_vm15 = vcmp.eq.s32.totalorder %v318_v35, %v1004_v42  ;;  %v333_v58 = vsel %vm327_vm10, %v950_v0, 0.0  ;;  %v335_v59 = vsel %vm329_vm11, %v958_v4, 0.0  ;;  %v334_v61 = vsel %vm328_vm13, %v952_v1, 0.0 }
  0x22   : > { %v255_v10 = vmax.f32 %v254_v8, %v958_v4  ;;  %v264_v11 = vmax.f32 %v263_v9, %v960_v5  ;;  %v336_v62 = vsel %vm330_vm14, %v960_v5, 0.0  ;;  %v337_v63 = vsel %vm331_vm15, %v954_v2, 0.0 }
  0x23   : > { %vm357_vm13 = vcmp.ne.s32.totalorder %v983_v28, 255  ;;  %vm457_vm14 = vcmask 1040384   ;;  %vm484_vm15 = vcmp.eq.s32.totalorder %v972_v21, 0 }
  0x24   : > { %v256_v12 = vrot.slane %v255_v10, 4  ;;  %v265_v13 = vrot.slane %v264_v11, 4 }
  0x26   : > { %v257_v14 = vmax.f32 %v255_v10, %v256_v12  ;;  %v266_v15 = vmax.f32 %v264_v11, %v265_v13  ;;  %v339_v12 = vadd.f32 %v335_v59, %v333_v58 }
  0x28   : > { %v258_v17 = vrot.slane %v257_v14, 2  ;;  %v267_v18 = vrot.slane %v266_v15, 2 }
  0x2a   : > { %v259_v19 = vmax.f32 %v257_v14, %v258_v17  ;;  %v268_v20 = vmax.f32 %v266_v15, %v267_v18 }
  0x2c   : > { %v260_v22 = vrot.slane %v259_v19, 1  ;;  %v269_v23 = vrot.slane %v268_v20, 1 }
  0x2e   : > { %v977_v24 = vmax.f32 %v259_v19, %v260_v22  ;;  %v979_v25 = vmax.f32 %v268_v20, %v269_v23 }
  0x30   : > { %v271_v29 = vsub.f32 %v950_v0, %v977_v24  ;;  %v272_v30 = vsub.f32 %v952_v1, %v979_v25  ;;  %v273_v31 = vsub.f32 %v958_v4, %v977_v24  ;;  %v274_v32 = vsub.f32 %v960_v5, %v979_v25 }
  0x31   : > { %v275_v33 = vsub.f32 %v954_v2, %v977_v24  ;;  %v276_v34 = vsub.f32 %v956_v3, %v979_v25  ;;  %vm379_vm1 = vcmp.eq.f32.partialorder %v950_v0, %v977_v24  ;;  %vm380_vm2 = vcmp.eq.f32.partialorder %v952_v1, %v979_v25 }
  0x32   : > { %v277_v37 = vmul.f32 1.442695, %v271_v29  ;;  %v279_v38 = vmul.f32 1.442695, %v272_v30  ;;  %v281_v39 = vmul.f32 1.442695, %v273_v31  ;;  %vm381_vm3 = vcmp.eq.f32.partialorder %v958_v4, %v977_v24 }
  0x33   : > { %v283_v40 = vmul.f32 1.442695, %v274_v32  ;;  %v285_v41 = vmul.f32 1.442695, %v275_v33  ;;  %v287_v43 = vmul.f32 1.442695, %v276_v34  ;;  %vm383_vm4 = vcmp.eq.f32.partialorder %v954_v2, %v977_v24 }
  0x34   : > { %731 = vpow2.f32 %v277_v37  ;;  %vm382_vm5 = vcmp.eq.f32.partialorder %v960_v5, %v979_v25  ;;  %vm384_vm6 = vcmp.eq.f32.partialorder %v956_v3, %v979_v25  ;;  %v385_v44 = vsel %vm379_vm1, %v972_v21, 19 }
  0x35   : > { %733 = vpow2.f32 %v279_v38  ;;  %v386_v46 = vsel %vm380_vm2, %v972_v21, 19  ;;  %v389_v47 = vsel %vm383_vm4, %v318_v35, 19  ;;  %v387_v48 = vsel %vm381_vm3, %v317_v26, 19 }
  0x36   : > { %735 = vpow2.f32 %v281_v39  ;;  %v390_v49 = vsel %vm384_vm6, %v318_v35, 19  ;;  %v391_v50 = vsel %vm252_vm0, %v389_v47, 2147483647  ;;  %v388_v51 = vsel %vm382_vm5, %v317_v26, 19 }
  0x37   : > { %737 = vpow2.f32 %v283_v40  ;;  %vm392_vm7 = vcmp.lt.s32.totalorder %v385_v44, %v391_v50  ;;  %v405_v52 = vsel %vm252_vm0, %v390_v49, 2147483647  ;;  %vm332_vm1 = vcmp.eq.s32.totalorder %v318_v35, %v1020_v45 }
  0x38   : > { %739 = vpow2.f32 %v285_v41  ;;  %v393_v53 = vsel %vm392_vm7, %v385_v44, %v391_v50  ;;  %vm406_vm8 = vcmp.lt.s32.totalorder %v386_v46, %v405_v52  ;;  %v338_v8 = vsel %vm332_vm1, %v956_v3, 0.0 }
  0x39   : > { %741 = vpow2.f32 %v287_v43  ;;  %vm394_vm9 = vcmp.lt.s32.totalorder %v393_v53, %v387_v48  ;;  %v407_v54 = vsel %vm406_vm8, %v386_v46, %v405_v52  ;;  %v340_v0 = vsel %vm252_vm0, %v337_v63, 0.0 }
  0x3a   : > { %vm408_vm12 = vcmp.lt.s32.totalorder %v407_v54, %v388_v51  ;;  %v395_v55 = vsel %vm394_vm9, %v393_v53, %v387_v48  ;;  %v348_v4 = vadd.f32 %v336_v62, %v334_v61  ;;  %v349_v5 = vsel %vm252_vm0, %v338_v8, 0.0 }
  0x3b   : > { %v409_v56 = vsel %vm408_vm12, %v407_v54, %v388_v51  ;;  %v396_v6 = vrot.slane %v395_v55, 4  ;;  %v341_v18 = vadd.f32 %v340_v0, %v339_v12 }
  0x3c   : > { %v410_v9 = vrot.slane %v409_v56, 4  ;;  %v350_v20 = vadd.f32 %v349_v5, %v348_v4 }
  0x3d   : > { %vm397_vm2 = vcmp.lt.s32.totalorder %v395_v55, %v396_v6  ;;  %v342_v31 = vrot.slane %v341_v18, 4 }
  0x3e   : > { %v732_v57 = vpop.eup %731  ;;  %vm411_vm3 = vcmp.lt.s32.totalorder %v409_v56, %v410_v9  ;;  %v398_v22 = vsel %vm397_vm2, %v395_v55, %v396_v6  ;;  %v351_v34 = vrot.slane %v350_v20, 4 }
  0x3f   : > { %v734_v60 = vpop.eup %733  ;;  %v412_v26 = vsel %vm411_vm3, %v409_v56, %v410_v9  ;;  %v399_v32 = vrot.slane %v398_v22, 2  ;;  %v343_v40 = vadd.f32 %v342_v31, %v341_v18 }
  0x40   : > { %v736_v7 = vpop.eup %735  ;;  %v413_v35 = vrot.slane %v412_v26, 2  ;;  %v352_v43 = vadd.f32 %v351_v34, %v350_v20 }
  0x41   : > { %v738_v10 = vpop.eup %737  ;;  %v289_v11 = vadd.f32 %v736_v7, %v732_v57  ;;  %v344_v49 = vrot.slane %v343_v40, 2  ;;  %v863_v57 = vmov 1966171168  }
  0x42   : > { %v740_v13 = vpop.eup %739  ;;  %v298_v14 = vadd.f32 %v738_v10, %v734_v60  ;;  %vm414_vm4 = vcmp.lt.s32.totalorder %v412_v26, %v413_v35  ;;  %v353_v51 = vrot.slane %v352_v43, 2  ;;  %v364_v58 = vunpack.c.l.s4 %v863_v57 }
  0x43   : > { %v742_v15 = vpop.eup %741  ;;  %v290_v1 = vsel %vm252_vm0, %v740_v13, 0.0  ;;  %v415_v50 = vsel %vm414_vm4, %v412_v26, %v413_v35  ;;  %v345_v54 = vadd.f32 %v344_v49, %v343_v40 }
  0x44   : > { %v291_v2 = vadd.f32 %v290_v1, %v289_v11  ;;  %v299_v17 = vsel %vm252_vm0, %v742_v15, 0.0  ;;  %vm400_vm0 = vcmp.lt.s32.totalorder %v398_v22, %v399_v32  ;;  %v416_v53 = vrot.slane %v415_v50, 1 }
  0x45   : > { %v300_v3 = vadd.f32 %v299_v17, %v298_v14  ;;  %v401_v47 = vsel %vm400_vm0, %v398_v22, %v399_v32  ;;  %v354_v55 = vadd.f32 %v353_v51, %v352_v43  ;;  %v346_v56 = vrot.slane %v345_v54, 1 }
  0x46   : > { %v292_v19 = vrot.slane %v291_v2, 4  ;;  %v402_v52 = vrot.slane %v401_v47, 1  ;;  %vm417_vm6 = vcmp.lt.s32.totalorder %v415_v50, %v416_v53  ;;  %v365_v8 = vunpack.c.0.s8 %v364_v58 }
  0x47   : > { %v301_v23 = vrot.slane %v300_v3, 4  ;;  %v355_v59 = vrot.slane %v354_v55, 1  ;;  %v418_v61 = vsel %vm417_vm6, %v415_v50, %v416_v53  ;;  %v347_v7 = vadd.f32 %v346_v56, %v345_v54 }
  0x48   : > { %v293_v29 = vadd.f32 %v292_v19, %v291_v2  ;;  %vm403_vm5 = vcmp.lt.s32.totalorder %v401_v47, %v402_v52  ;;  %vm420_vm8 = vcmp.eq.s32.totalorder %v418_v61, %v1020_v45  ;;  %v368_v4 = vsub.s32 %v365_v8, %v972_v21 }
  0x49   : > { %v302_v30 = vadd.f32 %v301_v23, %v300_v3  ;;  %v404_v60 = vsel %vm403_vm5, %v401_v47, %v402_v52  ;;  %v356_v11 = vadd.f32 %v355_v59, %v354_v55  ;;  %v864_v15 = vmov 1.0  }
  0x4a   : > { %v294_v33 = vrot.slane %v293_v29, 2  ;;  %vm419_vm7 = vcmp.eq.s32.totalorder %v404_v60, %v1004_v42  ;;  %v483_v47 = vand.u32 127, %v315_v16 }
  0x4b   : > { %v303_v37 = vrot.slane %v302_v30, 2 }
  0x4c   : > { %v295_v38 = vadd.f32 %v294_v33, %v293_v29  ;;  %vm485_vm1 = vcmp.eq.s32.totalorder %v483_v47, 0 }
  0x4d   : > { %v304_v39 = vadd.f32 %v303_v37, %v302_v30  ;;  %vm1059_vm2 = vmand %vm484_vm15, %vm485_vm1 }
  0x4e   : > { %v296_v41 = vrot.slane %v295_v38, 1 }
  0x4f   : > { %v305_v44 = vrot.slane %v304_v39, 1 }
  0x50   : > { %v297_v46 = vadd.f32 %v296_v41, %v295_v38 }
  0x51   : > { %v306_v48 = vadd.f32 %v305_v44, %v304_v39 }
  0x52   : > { %743 = vlog2.f32 %v297_v46 }
  0x53   : > { %745 = vlog2.f32 %v306_v48 }
  0x54   : > { %747 = vrcp.f32 %v297_v46 }
  0x55   : > { %749 = vrcp.f32 %v306_v48 }
  0x5c   : > { %v744_v62 = vpop.eup %743 }
  0x5d   : > { %v746_v63 = vpop.eup %745  ;;  %v308_v6 = vmul.f32 0.6931472, %v744_v62 }
  0x5e   : > { %v748_v9 = vpop.eup %747  ;;  %v310_v10 = vmul.f32 0.6931472, %v746_v63 }
  0x5f   : > { %v750_v12 = vpop.eup %749  ;;  %v311_v13 = vadd.f32 %v308_v6, %v977_v24  ;;  %vm421_vm9 = vcmp.gt.f32.partialorder %v748_v9, 0.5263158 }
  0x60   : > { %v312_v14 = vadd.f32 %v310_v10, %v979_v25  ;;  %vm422_vm10 = vcmp.gt.f32.partialorder %v750_v12, 0.5263158  ;;  %vm423_vm11 = vmand %vm419_vm7, %vm421_vm9 }
  0x61   : > { %v358_v0 = vsub.f32 %v311_v13, %v347_v7  ;;  %vm424_vm12 = vmand %vm420_vm8, %vm422_vm10  ;;  %v425_v1 = vsel %vm423_vm11, 0.0, %v864_v15 }
  0x62   : > { %v359_v42 = vsub.f32 %v312_v14, %v356_v11  ;;  %v426_v5 = vsel %vm424_vm12, 0.0, %v864_v15  ;;  %v470_v29 = vsel %vm457_vm14, %v425_v1, 0.0 }
  0x63   : > { %v429_v2 = vcombine.low %v425_v1, %v426_v5  ;;  %v471_v30 = vsel %vm457_vm14, %v426_v5, 0.0 }
  0x64   : > { %v362_v17 = vcombine.low %v358_v0, %v359_v42  ;;  %v472_v32 = vadd.f32 %v471_v30, %v470_v29 }
  0x65   : > { %v436_v3 = vrot.slane %v429_v2, %v368_v4 }
  0x66   : > { %v369_v45 = vrot.slane %v362_v17, %v368_v4 }
  0x67   : > { %v443_v24 = vrot.slane %v436_v3, %v368_v4 }
  0x68   : > { %v376_v18 = vrot.slane %v369_v45, %v368_v4 }
  0x6a   : > { %v378_v19 = vsel %vm357_vm13, %v376_v18, 0.0 }
  0x6b   : > { %v445_v25 = vmul.f32 %v443_v24, %v378_v19 }
  0x6d   : > { %v450_v20 = vrot.slane %v445_v25, %v321_v27  ;;  %v454_v22 = vrot.slane %v445_v25, %v325_v36 }
  0x6f   : > { %v458_v23 = vsel %vm457_vm14, %v450_v20, 0.0  ;;  %v459_v26 = vsel %vm457_vm14, %v454_v22, 0.0 }
  0x70   : > { %v460_v31 = vadd.f32 %v459_v26, %v458_v23 }
  0x72   : > { %461 = vadd.xlane.f32.xlu0 %v460_v31 }
  0x76   : > { %473 = vadd.xlane.f32.xlu0 %v472_v32 }
  0xff   : > { %v462_v28 = vpop.xlane.xlu0 %461 }
 0x100   : > { %v463_v33 = vrot.slane %v462_v28, 4 }
 0x102   : > { %v464_v34 = vadd.f32 %v463_v33, %v462_v28 }
 0x103   : > { %v474_v35 = vpop.xlane.xlu0 %473 }
 0x104   : > { %v465_v37 = vrot.slane %v464_v34, 2  ;;  %v475_v38 = vrot.slane %v474_v35, 4 }
 0x106   : > { %v476_v39 = vadd.f32 %v475_v38, %v474_v35  ;;  %v466_v27 = vadd.f32 %v465_v37, %v464_v34 }
 0x108   : > { %v477_v40 = vrot.slane %v476_v39, 2  ;;  %v467_v36 = vrot.slane %v466_v27, 1 }
 0x10a   : > { %v478_v41 = vadd.f32 %v477_v40, %v476_v39  ;;  %v468_v43 = vadd.f32 %v467_v36, %v466_v27 }
 0x10c   : > { %665 = vpush %v468_v43  ;;  %v479_v44 = vrot.slane %v478_v41, 1 }
 0x10e   : > { %v480_v46 = vadd.f32 %v479_v44, %v478_v41 }
 0x110   : > { %667 = vpush %v480_v46 }
 0x13d   : > { %s666_s19 = spop %665 }
 0x13e   : > { %v487_v49 = vstv %s666_s19 }
 0x13f   : > { %v488_v16 = vsel %vm1059_vm2, %v487_v49, 0.0 }
 0x140   : > { %489 = vst [vmem:[%s218_s11] sm:$0xff] %v488_v16  ;;  %s757_s11 = scalar_lea.vmem %s756_s9, 256 }
 0x141   : > { %s1081_s4 = spop %667  ;;  %p759_p2 = scmp.lt.s32.totalorder %s757_s11, %s751_s6 }
 0x142   : > { %v490_v21 = vstv %s1081_s4 }
 0x143   : > { %p760_p3 = por %p759_p2, %p758_p1 }
 0x145   : > { %p761_p5 = pnand %p760_p3, %p754_p0 }
 0x147   : > { %764 = shalt.err (!%p761_p5)
}
 0x148   : > { %s765_s10 = scalar_lea.hbm %s1072_s28, 128  ;;  %s769_s27 = scalar_lea.hbm %s1157_s2, 256 }
 0x149   : > { %p766_p6 = scmp.ne.s32.totalorder %s1072_s28, %s765_s10  ;;  %p770_p10 = scmp.lt.u32.totalorder %s1072_s28, %s1157_s2 }
 0x14a   : > { %p771_p11 = scmp.lt.u32.totalorder %s769_s27, %s765_s10  ;;  %p773_p13 = scmp.lt.u32.totalorder %s765_s10, %s1072_s28 }
 0x14b   : > { %p767_p7 = pnand %p766_p6, %p927_p4 }
 0x14c   : > { %p772_p12 = por %p771_p11, %p770_p10 }
 0x14d   : > { %p768_p9 = pneg %p767_p7 }
 0x14e   : > { %p774_p0 = por %p773_p13, %p772_p12 }
 0x150   : > { %p775_p1 = pnand %p774_p0, %p768_p9 }
 0x152   : > { %778 = shalt.err (!%p775_p1)
}
 0x153   : > { %669 = dma.vmem_to_hbm [thread:$0]  (%p927_p4), %s1074_s18, 128, %s1072_s28, %s494_s5   ;;  %v491_v50 = vsel %vm1059_vm2, %v490_v21, 0.0 }
 0x154   : > { %492 = vst [vmem:[%s1064_s21] sm:$0xff] %v491_v50  ;;  %s499_s4 = scalar_lea.sflag [#allocation5], %s1054_s8  ;;  %s779_s6 = scalar_lea.vmem %s1083_s23, 128 }
 0x155   : > { %p780_p2 = scmp.ne.s32.totalorder %s1083_s23, %s779_s6  ;;  %s866_s7 = smov [#allocation4]  }
 0x156   : > { %s783_s9 = sshll.u32 %s866_s7, 4  ;;  %s784_s9 = int_to_ptr.vmem [resolvable:$false] %s783_s9 }
 0x157   : > { %p781_p3 = pnand %p780_p2, %p927_p4  ;;  %s785_s11 = scalar_lea.vmem %s784_s9, 256 }
 0x158   : > { %p786_p6 = scmp.lt.s32.totalorder %s1083_s23, %s784_s9  ;;  %p787_p7 = scmp.lt.s32.totalorder %s785_s11, %s779_s6 }
 0x159   : > { %p782_p5 = pneg %p781_p3 }
 0x15a   : > { %p788_p9 = por %p787_p7, %p786_p6 }
 0x15c   : > { %p789_p10 = pnand %p788_p9, %p782_p5 }
 0x15e   : > { %792 = shalt.err (!%p789_p10)
}
 0x15f   : > { %s793_s8 = scalar_lea.hbm %s1079_s30, 128  ;;  %s797_s28 = scalar_lea.hbm %s1158_s3, 256 }
 0x160   : > { %p794_p11 = scmp.ne.s32.totalorder %s1079_s30, %s793_s8  ;;  %p798_p0 = scmp.lt.u32.totalorder %s1079_s30, %s1158_s3 }
 0x161   : > { %p799_p1 = scmp.lt.u32.totalorder %s797_s28, %s793_s8  ;;  %p801_p3 = scmp.lt.u32.totalorder %s793_s8, %s1079_s30 }
 0x162   : > { %p795_p12 = pnand %p794_p11, %p927_p4 }
 0x163   : > { %p800_p2 = por %p799_p1, %p798_p0 }
 0x164   : > { %p796_p13 = pneg %p795_p12 }
 0x165   : > { %p802_p5 = por %p801_p3, %p800_p2 }
 0x167   : > { %p803_p6 = pnand %p802_p5, %p796_p13 }
 0x169   : > { %806 = shalt.err (!%p803_p6)
}
 0x16a   : > { %670 = dma.vmem_to_hbm [thread:$0]  (%p927_p4), %s1083_s23, 128, %s1079_s30, %s499_s4  }
 0x16b PF: > { %p680_p7 = scmp.ge.s32.totalorder %s861_s17, 2  ;;  %s539_s19 = sand.u32 1, %s841_s12  }
 0x16c   : > { %s540_s26 = scalar_lea.sflag [#allocation3], %s539_s19 }
 0x16d   : > { %p674_p9 = pnand %p680_p7, %p934_p8 }
 0x16f   : > { %832 = dma.done.wait (!%p674_p9), %s540_s26, 128  }
 0x170   : > { %834 = vsyncadd (!%p674_p9), %s540_s26, 4294967168  ;;  %s549_s27 = scalar_lea.sflag [#allocation5], %s539_s19 }
 0x171   : > { %836 = dma.done.wait (!%p674_p9), %s549_s27, 128  }
 0x172   : > { %838 = vsyncadd (!%p674_p9), %s549_s27, 4294967168  ;;  %s20_s17 = sadd.s32 1, %s861_s17   ;;  %s1163_s12 = smov %s845_s13 }
 0x173   : > { %p17_p10 = scmp.ge.s32.totalorder %s20_s17, 4   ;;  %s1164_s13 = smov %s849_s14 }
 0x174   : > { %s1165_s14 = smov %s940_s25  ;;  %s1166_s15 = smov %s857_s16 }
 0x175   : > { %s1167_s16 = smov %s1169_s20  ;;  %19 = sbr.rel (!%p17_p10) target bundleno = 6 (0x6), region = 83 }
 0x17c   :  { %554 = vsyncpa [#allocation3], 1 }
 0x17d   :  { %556 = vsyncpa [#allocation3 + $0x1], 1 }
 0x17e   :  { %557 = vsyncpa [#allocation5], 1 }
 0x17f   :  { %559 = vsyncpa [#allocation5 + $0x1], 1 }

</bundles_post_ra>
